<compile_context>
chip_gen: v5e
topology: v5e:2x2
jax: 0.10.0
libtpu: 0.0.40
codegen_flags: <defaults>
</compile_context>

<pallas_src>
import functools

import jax
import jax.numpy as jnp
from jax.experimental import pallas as pl
from jax.experimental.pallas import tpu as pltpu

_BLOCK_BUDGET_BYTES = 6 * 1024 * 1024   # in-block + out-block bytes per grid step
_VMEM_LIMIT_BYTES = 32 * 1024 * 1024    # double-buffered footprint + headroom


def _round_up(x, m):
    return (x + m - 1) // m * m


def _largest_divisor_leq(n, cap):
    cap = int(max(1, min(cap, n, 8192)))
    for b in range(cap, 0, -1):
        if n % b == 0:
            return b
    return 1


def _pad2d_kernel(x_ref, o_ref, *, pad_top, pad_bot, pad_left, pad_right, value):
    # x_ref: (Bt, H, W)   o_ref: (Bt, Hp, Wp).  All offsets are static Python
    # ints, so every store below is a plain VMEM store (no gathers).
    bt, h, w = x_ref.shape
    wp = w + pad_left + pad_right
    dt = o_ref.dtype
    # Border-only fill (guarded at trace time), then one interior store.
    if pad_top:
        o_ref[:, pl.ds(0, pad_top), :] = jnp.full((bt, pad_top, wp), value, dt)
    if pad_bot:
        o_ref[:, pl.ds(pad_top + h, pad_bot), :] = jnp.full((bt, pad_bot, wp), value, dt)
    if pad_left:
        o_ref[:, pl.ds(pad_top, h), pl.ds(0, pad_left)] = jnp.full((bt, h, pad_left), value, dt)
    if pad_right:
        o_ref[:, pl.ds(pad_top, h), pl.ds(pad_left + w, pad_right)] = (
            jnp.full((bt, h, pad_right), value, dt))
    o_ref[:, pl.ds(pad_top, h), pl.ds(pad_left, w)] = x_ref[...]


def _pad2d_flat_kernel(x_ref, o_ref, *, top_elems, bot_elems, value):
    # Lane-dense path (pad_left == pad_right == 0): rows flattened into lanes.
    # x_ref: (Bt, H*W)   o_ref: (Bt, Hp*W)
    bt, hw = x_ref.shape
    dt = o_ref.dtype
    if top_elems:
        o_ref[:, pl.ds(0, top_elems)] = jnp.full((bt, top_elems), value, dt)
    if bot_elems:
        o_ref[:, pl.ds(top_elems + hw, bot_elems)] = jnp.full((bt, bot_elems), value, dt)
    o_ref[:, pl.ds(top_elems, hw)] = x_ref[...]


def pad2d_forward(x_nchw, padding, *, padding_mode="zeros", value=0.0):
    """Matches Padding.forward for padding_mode in {'zeros', 'constant'} (NCHW)."""
    if padding_mode not in ("zeros", "constant"):
        # TODO(synk): reflection / replication padding need halo gather reads;
        # only 'zeros' (module default) and 'constant' are implemented.
        raise NotImplementedError(padding_mode)
    if padding_mode == "zeros":
        value = 0

    if isinstance(padding, int):
        p_left = p_right = p_top = p_bot = int(padding)
    else:
        p_left, p_right, p_top, p_bot = (int(p) for p in padding)

    n, c, h, w = x_nchw.shape

    # Negative padding crops (PyTorch semantics): crop input, clamp pads.
    if min(p_left, p_right, p_top, p_bot) < 0:
        t0, b0 = max(0, -p_top), max(0, -p_bot)
        l0, r0 = max(0, -p_left), max(0, -p_right)
        x_nchw = x_nchw[:, :, t0:h - b0, l0:w - r0]
        n, c, h, w = x_nchw.shape
        p_top, p_bot = max(p_top, 0), max(p_bot, 0)
        p_left, p_right = max(p_left, 0), max(p_right, 0)

    hp = h + p_top + p_bot
    wp = w + p_left + p_right
    dtype = x_nchw.dtype
    itemsize = jnp.dtype(dtype).itemsize
    value = jnp.dtype(dtype).type(value)   # explicit cast (ints truncate on purpose)
    nc = n * c

    cost = pl.CostEstimate(
        flops=0, transcendentals=0,
        bytes_accessed=(nc * h * w + nc * hp * wp) * itemsize)
    cparams = pltpu.CompilerParams(
        dimension_semantics=("parallel",),
        vmem_limit_bytes=_VMEM_LIMIT_BYTES)

    # ---- lane-dense path: no width padding -> flatten rows into lanes -----
    if p_left == 0 and p_right == 0:
        sub = 8 * max(1, 4 // itemsize)          # sublane multiple for this dtype
        row_bytes = (h * w + hp * w) * itemsize
        cap = max(1, _BLOCK_BUDGET_BYTES // row_bytes)
        bt = None
        if nc % sub == 0 and cap >= sub:
            units = nc // sub
            cap_units = max(1, min(cap // sub, max(1, units // 2)))
            bt = _largest_divisor_leq(units, cap_units) * sub
        elif nc <= cap:
            bt = nc                               # full fused dim (always legal)
        if bt is not None:
            kernel = functools.partial(
                _pad2d_flat_kernel,
                top_elems=p_top * w, bot_elems=p_bot * w, value=value)
            out_flat = pl.pallas_call(
                kernel,
                out_shape=jax.ShapeDtypeStruct((nc, hp * w), dtype),
                grid_spec=pltpu.PrefetchScalarGridSpec(
                    num_scalar_prefetch=0,
                    grid=(nc // bt,),
                    in_specs=[pl.BlockSpec((bt, h * w), lambda i: (i, 0))],
                    out_specs=pl.BlockSpec((bt, hp * w), lambda i: (i, 0)),
                ),
                compiler_params=cparams,
                cost_estimate=cost,
            )(x_nchw.reshape(nc, h * w))
            return out_flat.reshape(n, c, hp, w)

    # ---- general path: fused (N*C) tiling, full (Hp, Wp) spatial block ----
    # TODO(synk): extremely large spatial dims (one image > VMEM budget) would
    # additionally need H-tiling; not required for these shapes.
    in_row = _round_up(h, 8) * _round_up(w, 128) * itemsize
    out_row = _round_up(hp, 8) * _round_up(wp, 128) * itemsize
    cap = max(1, _BLOCK_BUDGET_BYTES // (in_row + out_row))
    if nc >= 2:
        cap = min(cap, max(1, nc // 2))          # >= 2 grid steps for megacore
    bt = _largest_divisor_leq(nc, cap)

    kernel = functools.partial(
        _pad2d_kernel,
        pad_top=p_top, pad_bot=p_bot, pad_left=p_left, pad_right=p_right,
        value=value)

    out = pl.pallas_call(
        kernel,
        out_shape=jax.ShapeDtypeStruct((nc, hp, wp), dtype),
        grid_spec=pltpu.PrefetchScalarGridSpec(
            num_scalar_prefetch=0,
            grid=(nc // bt,),
            in_specs=[pl.BlockSpec((bt, h, w), lambda i: (i, 0, 0))],
            out_specs=pl.BlockSpec((bt, hp, wp), lambda i: (i, 0, 0)),
        ),
        compiler_params=cparams,
        cost_estimate=cost,
    )(x_nchw.reshape(nc, h, w))
    return out.reshape(n, c, hp, wp)


if __name__ == "__main__":
    key = jax.random.PRNGKey(0)
    x = jax.random.normal(key, (2, 4, 16, 16), dtype=jnp.float32)

    # Default module config: Padding(1) with padding_mode='zeros' -> ZeroPad2d(1)
    out = jax.block_until_ready(pad2d_forward(x, 1))
    ref = jnp.pad(x, ((0, 0), (0, 0), (1, 1), (1, 1)))
    assert out.shape == (2, 4, 18, 18), out.shape
    assert jnp.array_equal(out, ref)

    # Asymmetric padding, PyTorch order (left, right, top, bottom) = (2, 1, 0, 3)
    out2 = jax.block_until_ready(pad2d_forward(x, (2, 1, 0, 3)))
    ref2 = jnp.pad(x, ((0, 0), (0, 0), (0, 3), (2, 1)))
    assert out2.shape == (2, 4, 19, 19), out2.shape
    assert jnp.array_equal(out2, ref2)

    # Constant padding with a nonzero value (ConstantPad2d(2, 1.5))
    out3 = jax.block_until_ready(
        pad2d_forward(x, 2, padding_mode="constant", value=1.5))
    ref3 = jnp.pad(x, ((0, 0), (0, 0), (2, 2), (2, 2)), constant_values=1.5)
    assert out3.shape == (2, 4, 20, 20), out3.shape
    assert jnp.array_equal(out3, ref3)

    # Height-only padding -> lane-dense flat path (left, right, top, bottom) = (0, 0, 2, 1)
    out4 = jax.block_until_ready(pad2d_forward(x, (0, 0, 2, 1)))
    ref4 = jnp.pad(x, ((0, 0), (0, 0), (2, 1), (0, 0)))
    assert out4.shape == (2, 4, 19, 16), out4.shape
    assert jnp.array_equal(out4, ref4)

    # Negative padding crops (PyTorch semantics): (left, right, top, bottom) = (-1, 2, 0, 3)
    out5 = jax.block_until_ready(pad2d_forward(x, (-1, 2, 0, 3)))
    ref5 = jnp.pad(x[:, :, :, 1:], ((0, 0), (0, 0), (0, 3), (0, 2)))
    assert out5.shape == (2, 4, 19, 17), out5.shape
    assert jnp.array_equal(out5, ref5)

    print("KERNEL_OK")
</pallas_src>

<mosaic_0001>
module attributes {stable_mosaic.version = 11 : i64} {
  func.func @_pad2d_kernel(%arg0: i32, %arg1: memref<4x16x16xf32, #tpu.memory_space<vmem>>, %arg2: memref<4x18x18xf32, #tpu.memory_space<vmem>>) attributes {dimension_semantics = [#tpu.dimension_semantics<parallel>], iteration_bounds = array<i64: 2>, scalar_prefetch = 0 : i64, scratch_operands = 0 : i64, tpu.core_type = #tpu.core_type<tc>, window_params = [{transform_indices = @transform_0, window_bounds = array<i64: 4, 16, 16>}, {transform_indices = @transform_1, window_bounds = array<i64: 4, 18, 18>}]} {
    %cst = arith.constant 0.000000e+00 : f32
    %0 = vector.broadcast %cst : f32 to vector<4x1x18xf32>
    %c0 = arith.constant 0 : index
    %c0_0 = arith.constant 0 : index
    %c0_1 = arith.constant 0 : index
    %1 = vector.load %arg2[%c0, %c0_0, %c0_1] : memref<4x18x18xf32, #tpu.memory_space<vmem>>, vector<4x1x18xf32>
    tpu.vector_store %arg2[%c0, %c0_0, %c0_1], %0 {strides = array<i32>} : memref<4x18x18xf32, #tpu.memory_space<vmem>>, vector<4x1x18xf32>,
    %cst_2 = arith.constant 0.000000e+00 : f32
    %2 = vector.broadcast %cst_2 : f32 to vector<4x1x18xf32>
    %c0_3 = arith.constant 0 : index
    %c17 = arith.constant 17 : index
    %c0_4 = arith.constant 0 : index
    %3 = vector.load %arg2[%c0_3, %c17, %c0_4] : memref<4x18x18xf32, #tpu.memory_space<vmem>>, vector<4x1x18xf32>
    tpu.vector_store %arg2[%c0_3, %c17, %c0_4], %2 {strides = array<i32>} : memref<4x18x18xf32, #tpu.memory_space<vmem>>, vector<4x1x18xf32>,
    %cst_5 = arith.constant 0.000000e+00 : f32
    %4 = vector.broadcast %cst_5 : f32 to vector<4x16x1xf32>
    %c0_6 = arith.constant 0 : index
    %c1 = arith.constant 1 : index
    %c0_7 = arith.constant 0 : index
    %5 = vector.load %arg2[%c0_6, %c1, %c0_7] : memref<4x18x18xf32, #tpu.memory_space<vmem>>, vector<4x16x1xf32>
    tpu.vector_store %arg2[%c0_6, %c1, %c0_7], %4 {strides = array<i32>} : memref<4x18x18xf32, #tpu.memory_space<vmem>>, vector<4x16x1xf32>,
    %cst_8 = arith.constant 0.000000e+00 : f32
    %6 = vector.broadcast %cst_8 : f32 to vector<4x16x1xf32>
    %c0_9 = arith.constant 0 : index
    %c1_10 = arith.constant 1 : index
    %c17_11 = arith.constant 17 : index
    %7 = vector.load %arg2[%c0_9, %c1_10, %c17_11] : memref<4x18x18xf32, #tpu.memory_space<vmem>>, vector<4x16x1xf32>
    tpu.vector_store %arg2[%c0_9, %c1_10, %c17_11], %6 {strides = array<i32>} : memref<4x18x18xf32, #tpu.memory_space<vmem>>, vector<4x16x1xf32>,
    %c0_12 = arith.constant 0 : index
    %c0_13 = arith.constant 0 : index
    %c0_14 = arith.constant 0 : index
    %8 = vector.load %arg1[%c0_12, %c0_13, %c0_14] : memref<4x16x16xf32, #tpu.memory_space<vmem>>, vector<4x16x16xf32>
    %c0_15 = arith.constant 0 : index
    %c1_16 = arith.constant 1 : index
    %c1_17 = arith.constant 1 : index
    %9 = vector.load %arg2[%c0_15, %c1_16, %c1_17] : memref<4x18x18xf32, #tpu.memory_space<vmem>>, vector<4x16x16xf32>
    tpu.vector_store %arg2[%c0_15, %c1_16, %c1_17], %8 {strides = array<i32>} : memref<4x18x18xf32, #tpu.memory_space<vmem>>, vector<4x16x16xf32>,
    return
  }
  func.func @transform_0(%arg0: i32) -> (i32, i32, i32) {
    %c0_i32 = arith.constant 0 : i32
    %c0_i32_0 = arith.constant 0 : i32
    %c0_i32_1 = arith.constant 0 : i32
    return %arg0, %c0_i32, %c0_i32_0 : i32, i32, i32
  }
  func.func @transform_1(%arg0: i32) -> (i32, i32, i32) {
    %c0_i32 = arith.constant 0 : i32
    %c0_i32_0 = arith.constant 0 : i32
    %c0_i32_1 = arith.constant 0 : i32
    return %arg0, %c0_i32, %c0_i32_0 : i32, i32, i32
  }
}

</mosaic_0001>

<bundles_post_ra>
// kernel: tpu_custom_call.1
= control target key start
LH: loop header
LB: loop body
LE: loop exit
PB: predicated region body
PF: predicated region fallthrough
CT: control target
= control target key end

     0   :  { %6 = vsyncpa [#allocation3], 0  ;;  %s572_s0 = inlined_call_operand.hbm [shape: f32[8,16,16], index: 0, kind: input, shape index: {}]   ;;  %s573_s1 = inlined_call_operand.vmem [shape: f32[8,18,18], index: 1, kind: output, shape index: {}]  }
   0x1   :  { %8 = vsyncpa [#allocation3 + $0x1], 0  ;;  %s429_s6 = smov 0   ;;  %s431_s7 = smov 0  }
   0x2   :  { %s433_s8 = smov 0   ;;  %s435_s9 = smov 0  }
   0x3 LB: > { %s289_s10 = sadd.s32 4294967295, %s413_s9   ;;  %s449_s11 = sadd.s32 1, %s413_s9   ;;  %s413_s9 = sphi %s435_s9, %s580_s9   ;;  %s409_s8 = sphi %s433_s8, %s579_s8   ;;  %s405_s7 = sphi %s431_s7, %s578_s7   ;;  %s401_s6 = sphi %s429_s6, %s577_s6  }
   0x4   : > { %s18_s12 = ssub.s32 %s413_s9, %s449_s11  ;;  %s21_s13 = sadd.s32 1, %s409_s8 }
   0x5   : > { %p19_p0 = scmp.eq.s32.totalorder %s18_s12, 0  ;;  %p28_p1 = scmp.ne.s32.totalorder %s409_s8, %s405_s7 }
   0x6   : > { %p29_p2 = scmp.eq.s32.totalorder %s413_s9, 0  ;;  %p34_p3 = scmp.ne.s32.totalorder %s405_s7, %s401_s6 }
   0x7   : > { %s459_s14 = scalar_select %p19_p0, %s409_s8, %s21_s13  }
   0x8   : > { %p461_p4 = por %p29_p2, %p28_p1  ;;  %p35_p5 = scmp.eq.s32.totalorder %s289_s10, 0 }
   0x9   : > { %p312_p6 = scmp.lt.s32.totalorder %s413_s9, 2  ;;  %s84_s17 = sand.u32 1, %s409_s8  }
   0xa   : > { %p468_p7 = por %p35_p5, %p34_p3  ;;  %s293_s18 = sshll.u32 %s84_s17, 6 }
   0xb   : > { %s304_s19 = sshll.u32 %s413_s9, 6  ;;  %s88_s23 = scalar_lea.vmem [#allocation2], %s293_s18 }
   0xc   : > { %s94_s22 = scalar_lea.hbm %s572_s0, %s304_s19  ;;  %s97_s24 = sshll.u32 %s88_s23, 4  ;;  %s98_s24 = int_to_ptr.vmem [resolvable:$true] %s97_s24 }
   0xd   : > { %s95_s25 = sshll.u32 %s94_s22, 4  ;;  %p479_p8 = pnand %p312_p6, %p461_p4  ;;  %s96_s25 = int_to_ptr.hbm [resolvable:$true] %s95_s25 }
   0xe   : > { %p297_p9 = scmp.ge.s32.totalorder %s413_s9, 1  ;;  %s85_s27 = scalar_lea.sflag [#allocation3], %s84_s17 }
   0xf   : > { %s349_s28 = sshra.s32 %s96_s25, 4  ;;  %p353_p11 = pneg %p479_p8  ;;  %s350_s28 = int_to_ptr.hbm [resolvable:$true] %s349_s28 }
  0x10   : > { %s351_s29 = scalar_lea.hbm %s350_s28, 64  ;;  %s356_s3 = scalar_lea.hbm %s572_s0, 128 }
  0x11   : > { %p352_p10 = scmp.ne.s32.totalorder %s350_s28, %s351_s29  ;;  %p357_p0 = scmp.lt.s32.totalorder %s350_s28, %s572_s0 }
  0x12   : > { %p358_p1 = scmp.lt.s32.totalorder %s356_s3, %s351_s29 }
  0x13   : > { %p354_p12 = pnand %p353_p11, %p352_p10 }
  0x14   : > { %p359_p2 = por %p358_p1, %p357_p0 }
  0x15   : > { %p355_p13 = pneg %p354_p12 }
  0x17   : > { %p360_p3 = pnand %p359_p2, %p355_p13 }
  0x19   : > { %363 = shalt.err (!%p360_p3)
}
  0x1a   : > { %s415_s6 = smov 128   ;;  %s416_s12 = smov 8  }
  0x1b   : > { %311 = dma.hbm_to_vmem [thread:$0]  (!%p479_p8), %s96_s25, 1024, %s98_s24, %s85_s27, %s415_s6, %s415_s6, %s416_s12  }
  0x1c   : > { %p105_p4 = scmp.lt.s32.totalorder %s413_s9, 3 }
  0x1e   : > { %p106_p5 = pnand %p297_p9, %p105_p4 }
  0x1f   : > { %s111_s13 = sand.u32 (!%p106_p5), 1, %s405_s7  }
  0x20   : > { %109 = sbr.rel (%p106_p5) target bundleno = 173 (0xad), region = 24  ;;  %s298_s15 = sshll.u32 (!%p106_p5), %s111_s13, 6 }
  0x21   : > { %s112_s17 = scalar_lea.sflag (!%p106_p5), [#allocation3], %s111_s13  ;;  %s498_s18 = scalar_lea.vmem (!%p106_p5), [#allocation2], %s298_s15 }
  0x25   : > { %396 = dma.done.wait (%p468_p7), %s112_s17, 1024  }
  0x26   : > { %398 = vsyncadd (%p468_p7), %s112_s17, 4294966272  ;;  %s299_s19 = sshll.u32 %s289_s10, 2  ;;  %vm144_vm0 = vcmask 139264   ;;  %v173_v0 = vld [vmem:[%s498_s18 + $0x10] sm:$0xff]  ;;  %v171_v1 = vld [vmem:[%s498_s18] sm:$0xff]  ;;  %v417_v2 = vmov 0.0  }
  0x27   : > { %p138_p6 = scmp.lt.s32.totalorder %s299_s19, 7  ;;  %s418_s9 = smov 1   ;;  %v175_v3 = vld [vmem:[%s498_s18 + $0x20] sm:$0xff]  ;;  %v174_v4 = vld [vmem:[%s498_s18 + $0x18] sm:$0xff]  ;;  %v172_v5 = vld [vmem:[%s498_s18 + $0x8] sm:$0xff]  ;;  %vm153_vm1 = vcmask 7168  }
  0x28   : > { %191 = vrot.lane.b32.xlu1 %v173_v0, %s418_s9  ;;  %187 = vrot.lane.b32.xlu0 %v171_v1, %s418_s9  ;;  %v176_v6 = vld [vmem:[%s498_s18 + $0x28] sm:$0xff]  ;;  %v178_v7 = vld [vmem:[%s498_s18 + $0x38] sm:$0xff]  ;;  %vm162_vm2 = vcmask 146568   ;;  %vm211_vm3 = vcmask 138248  }
  0x29   : > { %s582_s19 = smov (!%p138_p6, %s299_s19), 7  ;;  %195 = vrot.lane.b32.xlu2 %v175_v3, %s418_s9  ;;  %v177_v8 = vld [vmem:[%s498_s18 + $0x30] sm:$0xff] }
  0x2a   : > { %s305_s20 = smul.u32 24, %s582_s19 }
  0x2c   : > { %s509_s23 = scalar_lea.vmem %s573_s1, %s305_s20 }
  0x2d   : > { %145 = vst.msk [vmem:[%s509_s23] sm:$0x1] %vm144_vm0, %v417_v2 }
  0x2e   : > { %146 = vst.msk [vmem:[%s509_s23 + $0x18] sm:$0x1] %vm144_vm0, %v417_v2 }
  0x2f   : > { %147 = vst.msk [vmem:[%s509_s23 + $0x30] sm:$0x1] %vm144_vm0, %v417_v2 }
  0x30   : > { %148 = vst.msk [vmem:[%s509_s23 + $0x48] sm:$0x1] %vm144_vm0, %v417_v2  ;;  %193 = vrot.lane.b32.xlu1 %v174_v4, %s418_s9  ;;  %189 = vrot.lane.b32.xlu0 %v172_v5, %s418_s9 }
  0x31   : > { %149 = vst.msk [vmem:[%s509_s23 + $0x11] sm:$0x1] %vm144_vm0, %v417_v2  ;;  %197 = vrot.lane.b32.xlu2 %v176_v6, %s418_s9 }
  0x32   : > { %150 = vst.msk [vmem:[%s509_s23 + $0x29] sm:$0x1] %vm144_vm0, %v417_v2 }
  0x33   : > { %151 = vst.msk [vmem:[%s509_s23 + $0x41] sm:$0x1] %vm144_vm0, %v417_v2 }
  0x34   : > { %152 = vst.msk [vmem:[%s509_s23 + $0x59] sm:$0x1] %vm144_vm0, %v417_v2 }
  0x35   : > { %154 = vst.msk [vmem:[%s509_s23 + $0x1] sm:$0xff] %vm153_vm1, %v417_v2 }
  0x36   : > { %156 = vst.msk [vmem:[%s509_s23 + $0x19] sm:$0xff] %vm153_vm1, %v417_v2 }
  0x37   : > { %158 = vst.msk [vmem:[%s509_s23 + $0x31] sm:$0xff] %vm153_vm1, %v417_v2 }
  0x38   : > { %201 = vrot.lane.b32.xlu1 %v178_v7, %s418_s9  ;;  %199 = vrot.lane.b32.xlu0 %v177_v8, %s418_s9  ;;  %160 = vst.msk [vmem:[%s509_s23 + $0x49] sm:$0xff] %vm153_vm1, %v417_v2 }
  0x39   : > { %163 = vst.msk [vmem:[%s509_s23 + $0x1] sm:$0xff] %vm162_vm2, %v417_v2 }
  0x3a   : > { %165 = vst.msk [vmem:[%s509_s23 + $0x19] sm:$0xff] %vm162_vm2, %v417_v2 }
  0x3b   : > { %167 = vst.msk [vmem:[%s509_s23 + $0x31] sm:$0xff] %vm162_vm2, %v417_v2 }
  0x3c   : > { %169 = vst.msk [vmem:[%s509_s23 + $0x49] sm:$0xff] %vm162_vm2, %v417_v2 }
  0x3d   : > { %155 = vst.msk [vmem:[%s509_s23 + $0x9] sm:$0xff] %vm153_vm1, %v417_v2 }
  0x3e   : > { %157 = vst.msk [vmem:[%s509_s23 + $0x21] sm:$0xff] %vm153_vm1, %v417_v2 }
  0x3f   : > { %159 = vst.msk [vmem:[%s509_s23 + $0x39] sm:$0xff] %vm153_vm1, %v417_v2 }
  0x40   : > { %161 = vst.msk [vmem:[%s509_s23 + $0x51] sm:$0xff] %vm153_vm1, %v417_v2 }
  0x41   : > { %164 = vst.msk [vmem:[%s509_s23 + $0x9] sm:$0xff] %vm162_vm2, %v417_v2 }
  0x42   : > { %166 = vst.msk [vmem:[%s509_s23 + $0x21] sm:$0xff] %vm162_vm2, %v417_v2 }
  0x43   : > { %168 = vst.msk [vmem:[%s509_s23 + $0x39] sm:$0xff] %vm162_vm2, %v417_v2 }
  0x44   : > { %170 = vst.msk [vmem:[%s509_s23 + $0x51] sm:$0xff] %vm162_vm2, %v417_v2 }
  0x83   : > { %v196_v9 = vpop.permute.xlu2 %195 }
  0x84   : > { %216 = vst.msk [vmem:[%s509_s23 + $0x31] sm:$0xff] %vm211_vm3, %v196_v9 }
  0x8b   : > { %v198_v12 = vpop.permute.xlu2 %197 }
  0x8c   : > { %217 = vst.msk [vmem:[%s509_s23 + $0x39] sm:$0xff] %vm211_vm3, %v198_v12 }
  0x9a   : > { %v192_v10 = vpop.permute.xlu1 %191  ;;  %v188_v11 = vpop.permute.xlu0 %187 }
  0x9b   : > { %212 = vst.msk [vmem:[%s509_s23 + $0x1] sm:$0xff] %vm211_vm3, %v188_v11 }
  0x9c   : > { %214 = vst.msk [vmem:[%s509_s23 + $0x19] sm:$0xff] %vm211_vm3, %v192_v10 }
  0xa2   : > { %v194_v13 = vpop.permute.xlu1 %193  ;;  %v190_v14 = vpop.permute.xlu0 %189 }
  0xa3   : > { %213 = vst.msk [vmem:[%s509_s23 + $0x9] sm:$0xff] %vm211_vm3, %v190_v14 }
  0xa4   : > { %215 = vst.msk [vmem:[%s509_s23 + $0x21] sm:$0xff] %vm211_vm3, %v194_v13 }
  0xaa   : > { %v202_v15 = vpop.permute.xlu1 %201  ;;  %v200_v16 = vpop.permute.xlu0 %199 }
  0xab   : > { %219 = vst.msk [vmem:[%s509_s23 + $0x51] sm:$0xff] %vm211_vm3, %v202_v15 }
  0xac   : > { %218 = vst.msk [vmem:[%s509_s23 + $0x49] sm:$0xff] %vm211_vm3, %v200_v16 }
  0xad PF: > { %p11_p7 = scmp.ge.s32.totalorder %s449_s11, 4   ;;  %s577_s6 = smov %s405_s7 }
  0xae   : > { %s578_s7 = smov %s409_s8  ;;  %s579_s8 = smov %s459_s14 }
  0xaf   : > { %s580_s9 = smov %s449_s11  ;;  %13 = sbr.rel (!%p11_p7) target bundleno = 3 (0x3), region = 64 }
  0xb4   :  { %244 = vsyncpa [#allocation3], 1 }
  0xb5   :  { %246 = vsyncpa [#allocation3 + $0x1], 1 }

</bundles_post_ra>
